<compile_context>
chip_gen: v7x
topology: tpu7x:2x2x1
jax: 0.10.0
libtpu: 0.0.40
codegen_flags: <defaults>
</compile_context>

<pallas_src>
import functools

import numpy as np
import jax
import jax.numpy as jnp
from jax.experimental import pallas as pl
from jax.experimental.pallas import tpu as pltpu


def _lrp_avgpool_kernel(a_ref, r_ref, pool_ref, pool_t_ref, out_ref, *, eps):
    # a_ref:      (TB, HW)   flat spatial map of one image-channel per row
    # r_ref:      (TB, OHW)  relevance of each pooled output cell
    # pool_ref:   (HW, OHW)  bf16 window-membership matrix, entries are 1/K
    # pool_t_ref: (OHW, HW)  its transpose (precomputed -> no in-kernel transpose)
    # out_ref:    (TB, HW)
    a = a_ref[...]

    # forward: z = adaptive_avg_pool2d(a) + eps.  Single-pass bf16 MXU matmul with f32
    # accumulation (1/K is folded into pool_ref, so the dot yields the window mean).
    z = jnp.dot(a.astype(jnp.bfloat16), pool_ref[...],
                preferred_element_type=jnp.float32) + eps               # (TB, OHW)

    # s = r / z ; the gradient of sum(z*s) spreads s / (KH*KW) over each window element
    # (1/K is folded into pool_t_ref).  Reciprocal on the EUP (free bundle slot).
    c_small = r_ref[...].astype(jnp.float32) * pl.reciprocal(z, approx=True)   # (TB, OHW)

    # one-hot matmul == broadcast c back onto the flat spatial axis
    c_wide = jnp.dot(c_small.astype(jnp.bfloat16), pool_t_ref[...],
                     preferred_element_type=jnp.float32)                # (TB, HW)

    # out = a * c, elementwise multiply in a's dtype
    out_ref[...] = (a * c_wide.astype(a.dtype)).astype(out_ref.dtype)


@functools.lru_cache(maxsize=None)
def _pool_matrices(H, W, oh, ow):
    """One-hot window-membership matrices scaled by 1/K, cached on device per shape."""
    kh, kw = H // oh, W // ow
    inv_k = 1.0 / float(kh * kw)
    # bins[h, w] = output bin of flat spatial index p = h*W + w
    bins = (np.arange(H)[:, None] // kh) * ow + (np.arange(W)[None, :] // kw)
    pool_np = (bins.reshape(H * W, 1) == np.arange(oh * ow)[None, :]).astype(np.float32)
    pool_np *= inv_k
    # 0 and 1/K are exact in bf16 when K is a power of two (the common case); otherwise
    # the ~2^-9 relative rounding is negligible next to the bf16 matmul itself.
    pool = jnp.asarray(pool_np, dtype=jnp.bfloat16)        # (HW, OHW)
    pool_t = jnp.asarray(pool_np.T, dtype=jnp.bfloat16)    # (OHW, HW)
    return pool, pool_t


def _vmem_capacity_bytes():
    try:
        cap = getattr(pltpu.get_tpu_info(), "vmem_capacity_bytes", None)
        if cap:
            return int(cap)
    except Exception:
        pass
    return 64 * 1024 * 1024     # conservative fallback: v7x per-TensorCore VMEM


def lrp_adaptive_avg_pool2d(a, r, output_size, eps=1e-5):
    """LRP backward pass for AdaptiveAvgPool2d.

    a: (N, C, H, W) activations into the pooling layer (NCHW).
    r: (N, C, OH, OW) relevance at the pooling output.
    Returns relevance at the pooling input, shape (N, C, H, W), dtype of `a`.
    """
    N, C, H, W = a.shape
    oh, ow = output_size
    # TODO(synk): PyTorch's non-divisible adaptive bins (unequal / overlapping windows)
    # are not expressible in this uniform-window one-hot formulation.
    assert H % oh == 0 and W % ow == 0, "uniform adaptive bins only"
    HW, OHW, M0 = H * W, oh * ow, N * C

    # Contiguous views only -- no HBM transposes/copies.
    a_v = a.reshape(M0, HW)
    r_v = r.reshape(M0, OHW)
    pool, pool_t = _pool_matrices(H, W, oh, ow)

    itemsize = np.dtype(a.dtype).itemsize
    sub_align = {4: 8, 2: 16, 1: 32}.get(itemsize, 8)      # dtype-aware sublane alignment
    row_bytes = HW * itemsize

    vmem_cap = _vmem_capacity_bytes()
    small_vmem = vmem_cap <= 64 * 1024 * 1024              # v7x-class part
    target_block_bytes = (2 if small_vmem else 6) * 1024 * 1024

    # Row-block sizing: keep per-step pipeline overhead negligible while guaranteeing
    # >=4 programs when there is enough work (2 pipelined steps per TC on dual-TC parts).
    tb = max(1, target_block_bytes // row_bytes)
    tb = min(tb, M0)
    if M0 >= 4 * sub_align:
        tb = min(tb, -(-M0 // 4))
    if tb < M0:
        tb = max(sub_align, (tb // sub_align) * sub_align)
        # prefer an exact divisor of M0 (no ragged masked-store tail block)
        d = tb
        while d >= sub_align and M0 % d != 0:
            d -= sub_align
        if d >= max(sub_align, tb // 2) and M0 % d == 0:
            tb = d
    tb = min(tb, M0)
    grid = (pl.cdiv(M0, tb),)

    # VMEM budget from the actual buffer plan: double-buffered a/out/r blocks plus the
    # (lane-padded, double-buffered) bf16 pool constants, with headroom.
    def _rup(x, m):
        return -(-x // m) * m
    hw_pad, ohw_pad = _rup(HW, 128), _rup(OHW, 128)
    block_bytes = (2 * tb * hw_pad + tb * ohw_pad) * itemsize
    pool_bytes = (_rup(HW, 16) * ohw_pad + _rup(OHW, 16) * hw_pad) * 2   # bf16
    vmem_need = 2 * (block_bytes + pool_bytes)
    vmem_limit = max(vmem_need + vmem_need // 4 + (1 << 20), 32 * 1024 * 1024)
    vmem_limit = int(min(vmem_limit, vmem_cap - vmem_cap // 8))

    flops = 4 * M0 * HW * OHW + 3 * M0 * HW            # two one-hot matmuls + elementwise
    bytes_accessed = (2 * M0 * HW + M0 * OHW) * itemsize + 2 * HW * OHW * 2
    cost = pl.CostEstimate(flops=flops, transcendentals=M0 * OHW,
                           bytes_accessed=bytes_accessed)

    # Note: input_output_aliases={0: 0} would save one HBM allocation, but it donates the
    # caller's activation buffer, which LRP pipelines typically still need for neighbouring
    # layers -- deliberately not applied.
    out = pl.pallas_call(
        functools.partial(_lrp_avgpool_kernel, eps=float(eps)),
        out_shape=jax.ShapeDtypeStruct((M0, HW), a.dtype),
        grid_spec=pltpu.PrefetchScalarGridSpec(
            num_scalar_prefetch=0,
            grid=grid,
            in_specs=[pl.BlockSpec((tb, HW), lambda i: (i, 0)),
                      pl.BlockSpec((tb, OHW), lambda i: (i, 0)),
                      # grid-invariant bf16 pool constants: constant index_map -> DMA'd once.
                      # TODO(synk): for very large spatial maps on 64-MiB-VMEM parts,
                      # single-buffer these (pl.Buffered(1)) or generate them in-kernel.
                      pl.BlockSpec((HW, OHW), lambda i: (0, 0)),
                      pl.BlockSpec((OHW, HW), lambda i: (0, 0))],
            out_specs=pl.BlockSpec((tb, HW), lambda i: (i, 0)),
        ),
        compiler_params=pltpu.CompilerParams(
            dimension_semantics=("parallel",),
            vmem_limit_bytes=vmem_limit),
        cost_estimate=cost,
    )(a_v, r_v, pool, pool_t)

    return out.reshape(N, C, H, W)


def _reference(a, r, output_size, eps=1e-5):
    N, C, H, W = a.shape
    oh, ow = output_size
    kh, kw = H // oh, W // ow
    z = a.reshape(N, C, oh, kh, ow, kw).mean(axis=(3, 5)) + eps
    s = r / z
    c = jnp.repeat(jnp.repeat(s / (kh * kw), kh, axis=2), kw, axis=3)
    return a * c


if __name__ == "__main__":
    key = jax.random.PRNGKey(0)
    ka, kr = jax.random.split(key)

    N, C, H, W = 2, 4, 16, 16
    output_size = (4, 4)          # AdaptiveAvgPool2d((4, 4))
    eps = 1e-5

    # Activations feeding an avg-pool are post-ReLU in practice -> nonnegative, which
    # keeps z well away from zero (same conditioning as the PyTorch use).
    a = jax.random.uniform(ka, (N, C, H, W), dtype=jnp.float32)
    r = jax.random.normal(kr, (N, C, output_size[0], output_size[1]),
                          dtype=jnp.float32)

    out = jax.block_until_ready(lrp_adaptive_avg_pool2d(a, r, output_size, eps=eps))

    ref = _reference(a, r, output_size, eps=eps)
    assert out.shape == a.shape and out.dtype == a.dtype
    # bf16 single-pass matmuls + EUP approximate reciprocal -> ~1e-2 relative accuracy
    assert jnp.allclose(out, ref, atol=2e-2, rtol=2e-2), "mismatch vs reference"

    print("KERNEL_OK")
</pallas_src>

<mosaic_0001>
module attributes {stable_mosaic.version = 11 : i64} {
  func.func @_lrp_avgpool_kernel(%arg0: i32, %arg1: memref<8x256xf32, #tpu.memory_space<vmem>>, %arg2: memref<8x16xf32, #tpu.memory_space<vmem>>, %arg3: memref<256x16xbf16, #tpu.memory_space<vmem>>, %arg4: memref<16x256xbf16, #tpu.memory_space<vmem>>, %arg5: memref<8x256xf32, #tpu.memory_space<vmem>>) attributes {dimension_semantics = [#tpu.dimension_semantics<parallel>], iteration_bounds = array<i64: 1>, scalar_prefetch = 0 : i64, scratch_operands = 0 : i64, tpu.core_type = #tpu.core_type<tc>, window_params = [{transform_indices = @transform_0, window_bounds = array<i64: 8, 256>}, {transform_indices = @transform_1, window_bounds = array<i64: 8, 16>}, {pipeline_mode = #tpu.pipeline_mode<synchronous>, transform_indices = @transform_2, window_bounds = array<i64: 256, 16>}, {pipeline_mode = #tpu.pipeline_mode<synchronous>, transform_indices = @transform_3, window_bounds = array<i64: 16, 256>}, {transform_indices = @transform_4, window_bounds = array<i64: 8, 256>}]} {
    %c0 = arith.constant 0 : index
    %c0_0 = arith.constant 0 : index
    %0 = vector.load %arg1[%c0, %c0_0] : memref<8x256xf32, #tpu.memory_space<vmem>>, vector<8x256xf32>
    %1 = arith.truncf %0 : vector<8x256xf32> to vector<8x256xbf16>
    %c0_1 = arith.constant 0 : index
    %c0_2 = arith.constant 0 : index
    %2 = vector.load %arg3[%c0_1, %c0_2] : memref<256x16xbf16, #tpu.memory_space<vmem>>, vector<256x16xbf16>
    %cst = arith.constant dense<0.000000e+00> : vector<8x16xf32>
    %3 = tpu.matmul %1, %2, %cst {dimension_numbers = #tpu.dot_dimension_numbers<[1], [0], [0], [1], [0, 0, 1, 1], [], []>} : vector<8x256xbf16>, vector<256x16xbf16>, vector<8x16xf32> -> vector<8x16xf32>
    %cst_3 = arith.constant 9.99999974E-6 : f32
    %4 = vector.broadcast %cst_3 : f32 to vector<8x16xf32>
    %5 = arith.addf %3, %4 : vector<8x16xf32>
    %c0_4 = arith.constant 0 : index
    %c0_5 = arith.constant 0 : index
    %6 = vector.load %arg2[%c0_4, %c0_5] : memref<8x16xf32, #tpu.memory_space<vmem>>, vector<8x16xf32>
    %7 = tpu.reciprocal %5 {approx = true} : vector<8x16xf32> -> vector<8x16xf32>
    %8 = arith.mulf %6, %7 : vector<8x16xf32>
    %9 = arith.truncf %8 : vector<8x16xf32> to vector<8x16xbf16>
    %c0_6 = arith.constant 0 : index
    %c0_7 = arith.constant 0 : index
    %10 = vector.load %arg4[%c0_6, %c0_7] : memref<16x256xbf16, #tpu.memory_space<vmem>>, vector<16x256xbf16>
    %cst_8 = arith.constant dense<0.000000e+00> : vector<8x256xf32>
    %11 = tpu.matmul %9, %10, %cst_8 {dimension_numbers = #tpu.dot_dimension_numbers<[1], [0], [0], [1], [0, 0, 1, 1], [], []>} : vector<8x16xbf16>, vector<16x256xbf16>, vector<8x256xf32> -> vector<8x256xf32>
    %12 = arith.mulf %0, %11 : vector<8x256xf32>
    %c0_9 = arith.constant 0 : index
    %c0_10 = arith.constant 0 : index
    %13 = vector.load %arg5[%c0_9, %c0_10] : memref<8x256xf32, #tpu.memory_space<vmem>>, vector<8x256xf32>
    tpu.vector_store %arg5[%c0_9, %c0_10], %12 {strides = array<i32>} : memref<8x256xf32, #tpu.memory_space<vmem>>, vector<8x256xf32>,
    return
  }
  func.func @transform_0(%arg0: i32) -> (i32, i32) {
    %c0_i32 = arith.constant 0 : i32
    %c0_i32_0 = arith.constant 0 : i32
    return %arg0, %c0_i32 : i32, i32
  }
  func.func @transform_1(%arg0: i32) -> (i32, i32) {
    %c0_i32 = arith.constant 0 : i32
    %c0_i32_0 = arith.constant 0 : i32
    return %arg0, %c0_i32 : i32, i32
  }
  func.func @transform_2(%arg0: i32) -> (i32, i32) {
    %c0_i32 = arith.constant 0 : i32
    %c0_i32_0 = arith.constant 0 : i32
    %c0_i32_1 = arith.constant 0 : i32
    return %c0_i32, %c0_i32_0 : i32, i32
  }
  func.func @transform_3(%arg0: i32) -> (i32, i32) {
    %c0_i32 = arith.constant 0 : i32
    %c0_i32_0 = arith.constant 0 : i32
    %c0_i32_1 = arith.constant 0 : i32
    return %c0_i32, %c0_i32_0 : i32, i32
  }
  func.func @transform_4(%arg0: i32) -> (i32, i32) {
    %c0_i32 = arith.constant 0 : i32
    %c0_i32_0 = arith.constant 0 : i32
    return %arg0, %c0_i32 : i32, i32
  }
}

</mosaic_0001>

<bundles_post_ra>
// kernel: tpu_custom_call.1
= control target key start
LH: loop header
LB: loop body
LE: loop exit
PB: predicated region body
PF: predicated region fallthrough
CT: control target
= control target key end

     0   :  { %s460_s0 = inlined_call_operand.vmem [shape: f32[8,256], index: 0, kind: input, shape index: {}]   ;;  %s461_s1 = inlined_call_operand.vmem [shape: f32[8,16], index: 1, kind: input, shape index: {}]   ;;  %s462_s2 = inlined_call_operand.vmem [shape: bf16[256,16], index: 2, kind: input, shape index: {}]   ;;  %s463_s3 = inlined_call_operand.vmem [shape: bf16[16,256], index: 3, kind: input, shape index: {}]   ;;  %s464_s4 = inlined_call_operand.hbm [shape: f32[8,256], index: 4, kind: output, shape index: {}]  }
   0x1   :  { %v313_v0 = vld [vmem:[%s462_s2 + $0x40] sm:$0xff]   ;;  %v315_v2 = vld [vmem:[%s462_s2 + $0x48] sm:$0xff]   ;;  %v317_v4 = vld [vmem:[%s462_s2 + $0x50] sm:$0xff]  }
   0x2   :  { %v314_v1 = vld [vmem:[%s462_s2] sm:$0xff]   ;;  %289 = vmatprep.subr.bf16.mxu0 %v313_v0  ;;  %v316_v3 = vld [vmem:[%s462_s2 + $0x8] sm:$0xff]   ;;  %v318_v5 = vld [vmem:[%s462_s2 + $0x10] sm:$0xff]  }
   0x3   :  { %290 = vmatpush3.bf16.msra.mxu0 %v314_v1  ;;  %v319_v6 = vld [vmem:[%s462_s2 + $0x58] sm:$0xff]   ;;  %v321_v8 = vld [vmem:[%s462_s2 + $0x60] sm:$0xff]   ;;  %v323_v10 = vld [vmem:[%s462_s2 + $0x68] sm:$0xff]  }
   0x4   :  { %291 = vmatprep.subr.bf16.mxu0 %v315_v2  ;;  %v320_v7 = vld [vmem:[%s462_s2 + $0x18] sm:$0xff]   ;;  %v322_v9 = vld [vmem:[%s462_s2 + $0x20] sm:$0xff]   ;;  %v20_v11 = vld [vmem:[%s460_s0 + $0x8] sm:$0xff] }
   0x5   :  { %v22_v12 = vpack.c.bf16 %v20_v11, %v20_v11 }
   0x7   :  { %292 = vmatpush3.bf16.msra.mxu0 %v316_v3 }
   0x8   :  { %293 = vmatprep.subr.bf16.mxu0 %v317_v4 }
   0xb   :  { %294 = vmatpush3.bf16.msra.mxu0 %v318_v5 }
   0xc   :  { %295 = vmatprep.subr.bf16.mxu0 %v319_v6 }
   0xf   :  { %296 = vmatpush3.bf16.msra.mxu0 %v320_v7 }
  0x10   :  { %297 = vmatprep.subr.bf16.mxu0 %v321_v8 }
  0x11   :  { %9 = vsyncpa [#allocation3], 0  ;;  %v324_v13 = vld [vmem:[%s462_s2 + $0x28] sm:$0xff]   ;;  %183 = vmatprep.mubr.bf16.mxu0 %v22_v12  ;;  %v325_v14 = vld [vmem:[%s462_s2 + $0x70] sm:$0xff]   ;;  %v358_v22 = vmov 0   ;;  %vm207_vm0 = vcmask 130048  }
  0x12   :  { %v326_v15 = vld [vmem:[%s462_s2 + $0x30] sm:$0xff]   ;;  %v327_v16 = vld [vmem:[%s462_s2 + $0x78] sm:$0xff]   ;;  %v19_v18 = vld [vmem:[%s460_s0] sm:$0xff]  ;;  %243 = vmatprep.mubr.bf16.mxu1 %v358_v22 }
  0x13   :  { %298 = vmatpush3.bf16.msra.mxu0 %v322_v9  ;;  %v328_v17 = vld [vmem:[%s462_s2 + $0x38] sm:$0xff]   ;;  %v21_v19 = vpack.c.bf16 %v19_v18, %v19_v18  ;;  %v329_v20 = vld [vmem:[%s463_s3 + $0x4] ss:$8 sps:$4 sm:$0xff]   ;;  %v331_v21 = vld [vmem:[%s463_s3] ss:$8 sps:$4 sm:$0xff]   ;;  %s359_s3 = smov [#allocation2]  }
  0x14   :  { %299 = vmatprep.subr.bf16.mxu0 %v323_v10  ;;  %211 = vmatprep.subr.bf16.mxu1 %v329_v20  ;;  %v191_v29 = vld [vmem:[%s461_s1] sm:$0xff]  ;;  %s262_s29 = sshll.u32 %s359_s3, 4  ;;  %s263_s29 = int_to_ptr.vmem [resolvable:$true] %s262_s29 }
  0x15   :  { %212 = vmatpush1.bf16.msra.mxu1 %v331_v21  ;;  %s334_s30 = scalar_lea.vmem %s263_s29, 256  ;;  %p339_p1 = scmp.lt.s32.totalorder %s263_s29, %s263_s29 }
  0x16   :  { %p335_p0 = scmp.ne.s32.totalorder %s263_s29, %s334_s30  ;;  %p340_p2 = scmp.lt.s32.totalorder %s334_s30, %s334_s30 }
  0x17   :  { %300 = vmatpush3.bf16.msra.mxu0 %v324_v13 }
  0x18   :  { %301 = vmatprep.subr.bf16.mxu0 %v325_v14  ;;  %p341_p3 = por %p340_p2, %p339_p1 }
  0x1a   :  { %p342_p4 = pnand %p341_p3, %p335_p0 }
  0x1b   :  { %302 = vmatpush3.bf16.msra.mxu0 %v326_v15 }
  0x1c   :  { %303 = vmatprep.subr.bf16.mxu0 %v327_v16 }
  0x1f   :  { %304 = vmatpush3.bf16.msra.mxu0 %v328_v17 }
  0x22   :  { %184 = vmatmul.mubr.bf16.vlgmr.msra.gmra.mrb[0].mxu0 %v21_v19 }
  0xf5   :  { %v305_v23 = vpop.f32.mrb[0].mxu0 }
  0xf6   :  { %v306_v24 = vpop.f32.mrb[1].mxu0 }
  0xf7   :  { %v307_v25 = vadd.f32 %v306_v24, %v305_v23  ;;  %v308_v26 = vpop.f32.mrb[2].mxu0 }
  0xf8   :  { %v309_v27 = vpop.f32.mrb[3].mxu0 }
  0xf9   :  { %v186_v28 = vadd.f32 1e-05, %v307_v25 }
  0xfb   :  { %332 = vrcp.f32 %v186_v28 }
 0x105   :  { %v333_v30 = vpop.eup %332 }
 0x106   :  { %v193_v31 = vmul.f32 %v333_v30, %v191_v29 }
 0x108   :  { %v194_v32 = vpack.c.bf16 %v193_v31, %v193_v31 }
 0x10a   :  { %288 = vmatmul.mubr.msk.bf16.vlgmr.msra.gmra.mrb[0].mxu1 %vm207_vm0, %v194_v32 }
 0x1dd   :  { %v245_v33 = vpop.f32.mrb[0].mxu1 }
 0x1de   :  { %v252_v34 = vmul.f32 %v245_v33, %v19_v18  ;;  %v247_v35 = vpop.f32.mrb[1].mxu1 }
 0x1df   :  { %v253_v36 = vmul.f32 %v247_v35, %v20_v11  ;;  %v249_v37 = vpop.f32.mrb[2].mxu1 }
 0x1e0   :  { %254 = vst [vmem:[#allocation2] sm:$0xff] %v252_v34  ;;  %v250_v38 = vpop.f32.mrb[3].mxu1 }
 0x1e1   :  { %255 = vst [vmem:[#allocation2 + $0x8] sm:$0xff] %v253_v36 }
 0x1e2   :  { %345 = shalt.err (!%p342_p4)
}
 0x1e3   :  { %s346_s6 = scalar_lea.hbm %s464_s4, 256 }
 0x1e4   :  { %p347_p5 = scmp.ne.s32.totalorder %s464_s4, %s346_s6  ;;  %p350_p6 = scmp.lt.u32.totalorder %s346_s6, %s464_s4 }
 0x1e6   :  { %p352_p7 = pnand %p350_p6, %p347_p5 }
 0x1e8   :  { %355 = shalt.err (!%p352_p7)
}
 0x1e9   :  { %265 = dma.vmem_to_hbm [thread:$0]  %s263_s29, 256, %s464_s4, [#allocation3]  }
 0x1ea   :  { %356 = dma.done.wait [#allocation3], 256  }
 0x1eb   :  { %357 = vsyncadd [#allocation3], 4294967040 }
 0x1ec   :  { %269 = vsyncpa [#allocation3], 1 }

</bundles_post_ra>
